<compile_context>
chip_gen: v7x
topology: tpu7x:2x2x1
jax: 0.10.0
libtpu: 0.0.40
codegen_flags: <defaults>
</compile_context>

<pallas_src>
import functools

import jax
import jax.numpy as jnp
from jax import lax
from jax.experimental import pallas as pl
from jax.experimental.pallas import tpu as pltpu


# --------------------------------------------------------------------------- #
# Kernel A: fused QKV projection (1x1x1 conv == channel matmul), tiled over N #
# --------------------------------------------------------------------------- #
def _qkv_proj_kernel(x_ref, w_ref, qkv_ref):
    # x_ref:   (C, tile)   bf16, channel-major tokens (tokens on the lane axis)
    # w_ref:   (3C, C)     bf16, comp-major rows: q = [0:C], k = [C:2C], v = [2C:3C]
    # qkv_ref: (3C, tile)  bf16 fused projection for this token tile
    acc = jnp.dot(w_ref[...], x_ref[...], preferred_element_type=jnp.float32)
    qkv_ref[...] = acc.astype(qkv_ref.dtype)


# --------------------------------------------------------------------------- #
# Kernel B: per-head attention, flash-style online softmax over key tiles     #
# --------------------------------------------------------------------------- #
def _attn_kernel(q_ref, k_ref, v_ref, o_ref, m_sc, l_sc, acc_sc,
                 *, heads, head_dim, n_valid, tile_k, mask_padding):
    # q_ref: (C, tq) bf16   k_ref/v_ref: (C, tk) bf16   o_ref: (C, tq) f32
    # m_sc/l_sc: (heads, tq, 1) f32     acc_sc: (heads, head_dim, tq) f32
    ki = pl.program_id(2)

    @pl.when(ki == 0)
    def _init():
        m_sc[...] = jnp.full_like(m_sc, -jnp.inf)
        l_sc[...] = jnp.zeros_like(l_sc)
        acc_sc[...] = jnp.zeros_like(acc_sc)

    c, tq = q_ref.shape
    tk = k_ref.shape[1]

    q = q_ref[...].reshape(heads, head_dim, tq)      # (h, d, tq) bf16
    k = k_ref[...].reshape(heads, head_dim, tk)      # (h, d, tk) bf16
    v = v_ref[...].reshape(heads, head_dim, tk)      # (h, d, tk) bf16

    # scores[h, i, j] = sum_d q[h, d, i] * k[h, d, j]
    # (no 1/sqrt(head_dim): the PyTorch forward never applies self.scale)
    s = jnp.einsum('hdi,hdj->hij', q, k, preferred_element_type=jnp.float32)

    if mask_padding:  # static trace-time flag; mask padded key columns
        col = ki * tile_k + lax.broadcasted_iota(jnp.int32, (1, 1, tk), 2)
        s = jnp.where(col < n_valid, s, -jnp.inf)

    m_prev = m_sc[...]
    m_new = jnp.maximum(m_prev, jnp.max(s, axis=-1, keepdims=True))   # (h, tq, 1)
    alpha = jnp.exp(m_prev - m_new)                                   # (h, tq, 1)
    p = jnp.exp(s - m_new)                                            # (h, tq, tk) f32
    l_sc[...] = alpha * l_sc[...] + jnp.sum(p, axis=-1, keepdims=True)
    m_sc[...] = m_new

    # out[h, d, i] += sum_j v[h, d, j] * p[h, i, j]   (== v @ attn^T, unnormalized)
    pv = jnp.einsum('hdj,hij->hdi', v, p.astype(jnp.bfloat16),
                    preferred_element_type=jnp.float32)               # (h, d, tq)
    acc_sc[...] = alpha.reshape(heads, 1, tq) * acc_sc[...] + pv

    @pl.when(ki == pl.num_programs(2) - 1)
    def _finalize():
        inv_l = pl.reciprocal(l_sc[...], approx=True).reshape(heads, 1, tq)
        out = acc_sc[...] * inv_l                                     # (h, d, tq)
        o_ref[...] = out.reshape(c, tq).astype(o_ref.dtype)           # channel = h*hd + d


# --------------------------------------------------------------------------- #
# Wrapper                                                                     #
# --------------------------------------------------------------------------- #
def _round_up(x, m):
    return (x + m - 1) // m * m


def _vmem_limit_bytes():
    cap = 128 * 1024 * 1024
    try:
        cap = int(pltpu.get_tpu_info().vmem_capacity_bytes)
    except Exception:
        pass
    # ~48 MiB on 64-MiB chips (v7x); capped at 96 MiB on 128-MiB chips (v5e/v6e).
    return int(min(96 * 1024 * 1024, (cap * 3) // 4))


def global_sparse_transformer(x, w_qkv, *, r, heads):
    """x: (B, C, H, W, Z) f32; w_qkv: (3C, C) Conv3d(C, 3C, 1, bias=False) weight."""
    B, C, H, W, Z = x.shape
    assert C % heads == 0, "channels must be divisible by heads"
    assert C % 8 == 0, "channels must be a multiple of 8 (TPU sublane tile)"
    hd = C // heads

    # AvgPool3d(kernel_size=1, stride=r) == strided subsampling.
    # TODO(synk): no clean in-kernel equivalent short of a gather DMA; done as an XLA slice.
    xs = x[:, :, ::r, ::r, ::r]
    Hs, Ws, Zs = xs.shape[2:]
    N = Hs * Ws * Zs

    # Token tile: 256 (v6e/v7x MXU width) when it divides the 128-padded token count,
    # otherwise 128 (always valid, enough for v5e's 4x128x128 MXU).
    n_pad = _round_up(N, 128)
    tile = 256 if (n_pad >= 256 and n_pad % 256 == 0) else 128
    n_tiles = n_pad // tile

    # Channel-major tokens on the lane axis, bf16, zero-padded to a lane multiple.
    x_cn = xs.reshape(B, C, N).astype(jnp.bfloat16)
    if n_pad != N:
        x_cn = jnp.pad(x_cn, ((0, 0), (0, 0), (0, n_pad - N)))

    # Conv weight rows: o = head*(3*hd) + comp*hd + dim  (torch view(B, heads, 3hd, N)
    # then split on dim=2).  Regroup comp-major so ONE fused matmul yields q rows [0:C],
    # k rows [C:2C], v rows [2C:3C], each ordered by output channel = head*hd + dim.
    w_cm = jnp.transpose(w_qkv.reshape(heads, 3, hd, C), (1, 0, 2, 3))
    w_cm = w_cm.reshape(3 * C, C).astype(jnp.bfloat16)

    vmem_limit = _vmem_limit_bytes()

    # ---- Kernel A: fused qkv projection -------------------------------------------
    proj_cost = pl.CostEstimate(
        flops=int(2 * B * (3 * C) * C * n_pad),
        transcendentals=0,
        bytes_accessed=int(2 * B * C * n_pad + 2 * B * 3 * C * n_pad + 2 * 3 * C * C),
    )
    qkv = pl.pallas_call(
        _qkv_proj_kernel,
        out_shape=jax.ShapeDtypeStruct((B, 3 * C, n_pad), jnp.bfloat16),
        grid_spec=pltpu.PrefetchScalarGridSpec(
            num_scalar_prefetch=0,
            grid=(B, n_tiles),
            in_specs=[
                pl.BlockSpec((None, C, tile), lambda b, n: (b, 0, n)),
                pl.BlockSpec((3 * C, C), lambda b, n: (0, 0)),
            ],
            out_specs=pl.BlockSpec((None, 3 * C, tile), lambda b, n: (b, 0, n)),
        ),
        compiler_params=pltpu.CompilerParams(
            dimension_semantics=("parallel", "parallel"),
            vmem_limit_bytes=vmem_limit,
        ),
        cost_estimate=proj_cost,
    )(x_cn, w_cm)

    # ---- Kernel B: flash-style attention over key tiles ----------------------------
    attn_cost = pl.CostEstimate(
        flops=int(4 * B * C * n_pad * n_pad),
        transcendentals=int(B * heads * n_pad * n_pad),
        bytes_accessed=int(2 * B * 3 * C * n_pad * n_tiles + 4 * B * C * n_pad),
    )
    attn_kernel = functools.partial(
        _attn_kernel, heads=heads, head_dim=hd, n_valid=N, tile_k=tile,
        mask_padding=(n_pad != N))

    out = pl.pallas_call(
        attn_kernel,
        out_shape=jax.ShapeDtypeStruct((B, C, n_pad), x.dtype),
        grid_spec=pltpu.PrefetchScalarGridSpec(
            num_scalar_prefetch=0,
            grid=(B, n_tiles, n_tiles),
            in_specs=[
                pl.BlockSpec((None, C, tile), lambda b, qi, ki: (b, 0, qi)),  # q rows
                pl.BlockSpec((None, C, tile), lambda b, qi, ki: (b, 1, ki)),  # k rows
                pl.BlockSpec((None, C, tile), lambda b, qi, ki: (b, 2, ki)),  # v rows
            ],
            out_specs=pl.BlockSpec((None, C, tile), lambda b, qi, ki: (b, 0, qi)),
            scratch_shapes=[
                pltpu.VMEM((heads, tile, 1), jnp.float32),    # running max  m
                pltpu.VMEM((heads, tile, 1), jnp.float32),    # running denom l
                pltpu.VMEM((heads, hd, tile), jnp.float32),   # output accumulator
            ],
        ),
        compiler_params=pltpu.CompilerParams(
            dimension_semantics=("parallel", "parallel", "arbitrary"),
            vmem_limit_bytes=vmem_limit,
        ),
        cost_estimate=attn_cost,
    )(qkv, qkv, qkv)

    # channel = head*hd + dim (matches torch .view); contiguous slice + reshape only.
    return out[:, :, :N].reshape(B, C, Hs, Ws, Zs)


# --------------------------------------------------------------------------- #
# References                                                                  #
# --------------------------------------------------------------------------- #
def _reference_f32(x, w_qkv, *, r, heads):
    """Pure-JAX f32 mirror of the PyTorch forward."""
    B, C, H, W, Z = x.shape
    hd = C // heads
    xs = x[:, :, ::r, ::r, ::r]
    Hs, Ws, Zs = xs.shape[2:]
    N = Hs * Ws * Zs
    xf = xs.reshape(B, C, N)
    qkv = jnp.einsum('oc,bcn->bon', w_qkv, xf).reshape(B, heads, 3 * hd, N)
    q, k, v = qkv[:, :, :hd], qkv[:, :, hd:2 * hd], qkv[:, :, 2 * hd:]
    attn = jax.nn.softmax(jnp.einsum('bhdi,bhdj->bhij', q, k), axis=-1)
    out = jnp.einsum('bhdj,bhij->bhdi', v, attn)
    return out.reshape(B, C, Hs, Ws, Zs)


def _reference_matched(x, w_qkv, *, r, heads):
    """Same math with the kernel's bf16-operand / f32-accumulate casts (tight check)."""
    B, C, H, W, Z = x.shape
    hd = C // heads
    xs = x[:, :, ::r, ::r, ::r]
    Hs, Ws, Zs = xs.shape[2:]
    N = Hs * Ws * Zs
    xf = xs.reshape(B, C, N).astype(jnp.bfloat16)
    w = w_qkv.astype(jnp.bfloat16)
    qkv = jnp.einsum('oc,bcn->bon', w, xf,
                     preferred_element_type=jnp.float32).astype(jnp.bfloat16)
    qkv = qkv.reshape(B, heads, 3 * hd, N)
    q, k, v = qkv[:, :, :hd], qkv[:, :, hd:2 * hd], qkv[:, :, 2 * hd:]
    s = jnp.einsum('bhdi,bhdj->bhij', q, k, preferred_element_type=jnp.float32)
    m = jnp.max(s, axis=-1, keepdims=True)
    p = jnp.exp(s - m)                                      # f32, unnormalized
    l = jnp.sum(p, axis=-1, keepdims=True)                  # f32
    pv = jnp.einsum('bhdj,bhij->bhdi', v, p.astype(jnp.bfloat16),
                    preferred_element_type=jnp.float32)
    out = pv / jnp.swapaxes(l, -1, -2)
    return out.reshape(B, C, Hs, Ws, Zs)


# --------------------------------------------------------------------------- #
# Self-test                                                                   #
# --------------------------------------------------------------------------- #
if __name__ == "__main__":
    def _run_case(B, C, H, W, Z, heads, r, key):
        kx, kw = jax.random.split(key)
        x = jax.random.normal(kx, (B, C, H, W, Z), dtype=jnp.float32)
        # Conv3d(C, 3C, kernel_size=1, bias=False) weight: (3C, C, 1, 1, 1) -> (3C, C)
        w_qkv = jax.random.normal(kw, (3 * C, C), dtype=jnp.float32) * (1.0 / C ** 0.5)

        y = jax.block_until_ready(global_sparse_transformer(x, w_qkv, r=r, heads=heads))
        y_m = _reference_matched(x, w_qkv, r=r, heads=heads)
        y_f = _reference_f32(x, w_qkv, r=r, heads=heads)

        assert y.shape == y_f.shape, (y.shape, y_f.shape)
        err_m = float(jnp.max(jnp.abs(y - y_m)))
        err_f = float(jnp.max(jnp.abs(y - y_f)))
        # Tight check vs precision-matched reference (bf16 MXU operands, f32 accum).
        assert jnp.allclose(y, y_m, atol=2e-2, rtol=2e-2), ("matched", err_m)
        # Looser sanity check vs the exact-f32 reference (bf16 rounding of q/k/v/p).
        assert jnp.allclose(y, y_f, atol=2e-1, rtol=2e-1), ("f32", err_f)

    key = jax.random.PRNGKey(0)
    k1, k2 = jax.random.split(key)
    # Case 1: head_dim < 8, token count not lane-aligned (N=216 -> padded+masked to 256).
    _run_case(B=2, C=16, H=12, W=12, Z=12, heads=4, r=2, key=k1)
    # Case 2: B == 1, head_dim == 8, N=512 with 256-wide tiles -> 2 q-tiles x 2 k-tiles,
    # exercising the online-softmax accumulation and the parallel q-tile axis.
    _run_case(B=1, C=32, H=16, W=16, Z=16, heads=4, r=2, key=k2)

    print("KERNEL_OK")
</pallas_src>

<mosaic_0001>
module attributes {stable_mosaic.version = 11 : i64} {
  func.func @_qkv_proj_kernel(%arg0: i32, %arg1: i32, %arg2: memref<1x16x256xbf16, #tpu.memory_space<vmem>>, %arg3: memref<48x16xbf16, #tpu.memory_space<vmem>>, %arg4: memref<1x48x256xbf16, #tpu.memory_space<vmem>>) attributes {dimension_semantics = [#tpu.dimension_semantics<parallel>, #tpu.dimension_semantics<parallel>], iteration_bounds = array<i64: 2, 1>, scalar_prefetch = 0 : i64, scratch_operands = 0 : i64, tpu.core_type = #tpu.core_type<tc>, window_params = [{transform_indices = @transform_0, window_bounds = array<i64: 1, 16, 256>}, {pipeline_mode = #tpu.pipeline_mode<synchronous>, transform_indices = @transform_1, window_bounds = array<i64: 48, 16>}, {transform_indices = @transform_2, window_bounds = array<i64: 1, 48, 256>}]} {
    %c0 = arith.constant 0 : index
    %c0_0 = arith.constant 0 : index
    %0 = vector.load %arg3[%c0, %c0_0] : memref<48x16xbf16, #tpu.memory_space<vmem>>, vector<48x16xbf16>
    %c0_1 = arith.constant 0 : index
    %c0_2 = arith.constant 0 : index
    %c0_3 = arith.constant 0 : index
    %1 = vector.load %arg2[%c0_1, %c0_2, %c0_3] : memref<1x16x256xbf16, #tpu.memory_space<vmem>>, vector<1x16x256xbf16>
    %2 = vector.shape_cast %1 : vector<1x16x256xbf16> to vector<16x256xbf16>
    %cst = arith.constant dense<0.000000e+00> : vector<48x256xf32>
    %3 = tpu.matmul %0, %2, %cst {dimension_numbers = #tpu.dot_dimension_numbers<[1], [0], [0], [1], [0, 0, 1, 1], [], []>} : vector<48x16xbf16>, vector<16x256xbf16>, vector<48x256xf32> -> vector<48x256xf32>
    %4 = arith.truncf %3 : vector<48x256xf32> to vector<48x256xbf16>
    %c0_4 = arith.constant 0 : index
    %c0_5 = arith.constant 0 : index
    %c0_6 = arith.constant 0 : index
    %5 = vector.load %arg4[%c0_4, %c0_5, %c0_6] : memref<1x48x256xbf16, #tpu.memory_space<vmem>>, vector<1x48x256xbf16>
    %6 = vector.shape_cast %5 : vector<1x48x256xbf16> to vector<48x256xbf16>
    %7 = vector.shape_cast %4 : vector<48x256xbf16> to vector<1x48x256xbf16>
    tpu.vector_store %arg4[%c0_4, %c0_5, %c0_6], %7 {strides = array<i32>} : memref<1x48x256xbf16, #tpu.memory_space<vmem>>, vector<1x48x256xbf16>,
    return
  }
  func.func @transform_0(%arg0: i32, %arg1: i32) -> (i32, i32, i32) {
    %c0_i32 = arith.constant 0 : i32
    %c0_i32_0 = arith.constant 0 : i32
    return %arg0, %c0_i32, %arg1 : i32, i32, i32
  }
  func.func @transform_1(%arg0: i32, %arg1: i32) -> (i32, i32) {
    %c0_i32 = arith.constant 0 : i32
    %c0_i32_0 = arith.constant 0 : i32
    %c0_i32_1 = arith.constant 0 : i32
    return %c0_i32, %c0_i32_0 : i32, i32
  }
  func.func @transform_2(%arg0: i32, %arg1: i32) -> (i32, i32, i32) {
    %c0_i32 = arith.constant 0 : i32
    %c0_i32_0 = arith.constant 0 : i32
    return %arg0, %c0_i32, %arg1 : i32, i32, i32
  }
}

</mosaic_0001>

<bundles_post_ra>
// kernel: tpu_custom_call.1
= control target key start
LH: loop header
LB: loop body
LE: loop exit
PB: predicated region body
PF: predicated region fallthrough
CT: control target
= control target key end

     0   :  { %7 = vsyncpa [#allocation3], 0  ;;  %s975_s0 = inlined_call_operand.hbm [shape: bf16[2,16,256], index: 0, kind: input, shape index: {}]   ;;  %s976_s1 = inlined_call_operand.hbm [shape: bf16[48,16], index: 1, kind: input, shape index: {}]   ;;  %s977_s2 = inlined_call_operand.hbm [shape: bf16[2,48,256], index: 2, kind: output, shape index: {}]  }
   0x1   :  { %9 = vsyncpa [#allocation3 + $0x1], 0 }
   0x2   :  { %10 = vsyncpa [#allocation6], 0 }
   0x3   :  { %11 = vsyncpa [#allocation4], 0 }
   0x4   :  { %13 = vsyncpa [#allocation4 + $0x1], 0  ;;  %s755_s9 = smov 0   ;;  %s757_s10 = smov 0  }
   0x5   :  { %s759_s11 = smov 0   ;;  %s761_s12 = smov 0  }
   0x6   :  { %s763_s13 = smov 0   ;;  %s765_s14 = smov 0  }
   0x7 LB: > { %s459_s15 = sadd.s32 4294967295, %s728_s14   ;;  %s460_s16 = sadd.s32 4294967294, %s728_s14   ;;  %s728_s14 = sphi %s765_s14, %s19_s14   ;;  %s724_s13 = sphi %s763_s13, %s1001_s13   ;;  %s720_s12 = sphi %s761_s12, %s1000_s12   ;;  %s716_s11 = sphi %s759_s11, %s999_s11   ;;  %s712_s10 = sphi %s757_s10, %s998_s10   ;;  %s708_s9 = sphi %s755_s9, %s997_s9  }
   0x8   : > { %p53_p0 = scmp.ne.s32.totalorder %s712_s10, %s708_s9  ;;  %p789_p1 = scmp.eq.s32.totalorder %s459_s15, 0 }
   0x9   : > { %p793_p2 = scmp.eq.s32.totalorder %s459_s15, 1  ;;  %p106_p3 = scmp.eq.s32.totalorder %s460_s16, 1 }
   0xa   : > { %s982_s17 = scalar_select %p789_p1, 1, 0 }
   0xb   : > { %s983_s18 = scalar_select %p793_p2, 1, 0 }
   0xc   : > { %p799_p4 = por %p789_p1, %p53_p0  ;;  %p461_p5 = scmp.ge.s32.totalorder %s728_s14, 1 }
   0xd   : > { %p804_p6 = por %p106_p3, %p53_p0  ;;  %p113_p7 = scmp.lt.s32.totalorder %s728_s14, 3 }
   0xe   : > { %s984_s19 = scalar_select %p799_p4, 1, 0 }
   0xf   : > { %s985_s20 = scalar_select %p804_p6, 1, 0 }
  0x10   : > { %p809_p8 = pnand %p461_p5, %p113_p7  ;;  %s730_s22 = smov [#allocation5]  }
  0x11   : > { %s125_s23 = sshll.u32 %s730_s22, 4  ;;  %s31_s25 = sadd.s32 1, %s724_s13  ;;  %s126_s23 = int_to_ptr.vmem [resolvable:$true] %s125_s23 }
  0x12   : > { %s986_s21 = scalar_select %p809_p8, 1, 0 }
  0x13   : > { %p506_p9 = pneg %p809_p8  ;;  %s584_s28 = scalar_lea.hbm %s976_s1, 384 }
  0x14   : > { %p585_p12 = scmp.ne.s32.totalorder %s976_s1, %s584_s28  ;;  %p591_p5 = scmp.lt.u32.totalorder %s584_s28, %s976_s1 }
  0x15   : > { %p818_p11 = pnand %p506_p9, %p789_p1 }
  0x17   : > { %p586_p13 = pneg %p818_p11 }
  0x19   : > { %p587_p0 = pnand %p586_p13, %p585_p12 }
  0x1b   : > { %p588_p3 = pneg %p587_p0 }
  0x1d   : > { %p593_p7 = pnand %p591_p5, %p588_p3 }
  0x1f   : > { %596 = shalt.err (!%p593_p7)
}
  0x20   : > { %s597_s5 = scalar_lea.vmem %s126_s23, 384  ;;  %p605_p1 = scmp.lt.s32.totalorder %s126_s23, %s126_s23 }
  0x21   : > { %p598_p9 = scmp.ne.s32.totalorder %s126_s23, %s597_s5  ;;  %p606_p4 = scmp.lt.s32.totalorder %s597_s5, %s597_s5 }
  0x23   : > { %p600_p10 = pnand %p598_p9, %p586_p13  ;;  %p607_p8 = por %p606_p4, %p605_p1 }
  0x25   : > { %p601_p6 = pneg %p600_p10 }
  0x27   : > { %p608_p2 = pnand %p607_p8, %p601_p6 }
  0x29   : > { %611 = shalt.err (!%p608_p2)
}
  0x2a   : > { %s731_s6 = smov 64   ;;  %s732_s7 = smov 4  }
  0x2b   : > { %509 = dma.hbm_to_vmem [thread:$0]  (!%p818_p11), %s976_s1, 384, %s126_s23, [#allocation6], %s731_s6, %s731_s6, %s732_s7  }
  0x2c   : > { %p33_p1 = scmp.ge.s32.totalorder %s31_s25, 2  ;;  %s40_s16 = sadd.s32 1, %s716_s11 }
  0x2d   : > { %p47_p2 = scmp.ne.s32.totalorder %s716_s11, %s712_s10  ;;  %p48_p4 = scmp.eq.s32.totalorder %s728_s14, 0 }
  0x2e   : > { %s1003_s25 = smov (%p33_p1, %s31_s25), 0  ;;  %p989_p8 = scmp.ne.s32.totalorder %s983_s18, 0 }
  0x2f   : > { %p845_p6 = por %p48_p4, %p47_p2  ;;  %s35_s24 = ssub.s32 %s724_s13, %s1003_s25 }
  0x30   : > { %p851_p10 = por %p989_p8, %p47_p2  ;;  %p519_p12 = scmp.lt.s32.totalorder %s728_s14, 2 }
  0x31   : > { %p38_p11 = scmp.eq.s32.totalorder %s35_s24, 0  ;;  %s139_s23 = sand.u32 1, %s716_s11  }
  0x32   : > { %s464_s27 = sshll.u32 %s139_s23, 4  ;;  %s487_s29 = sshll.u32 %s724_s13, 8 }
  0x33   : > { %s860_s28 = scalar_select %p38_p11, %s716_s11, %s40_s16  }
  0x34   : > { %s866_s4 = scalar_lea.hbm %s975_s0, %s487_s29  ;;  %s143_s18 = scalar_lea.vmem [#allocation2], %s464_s27 }
  0x35   : > { %s152_s5 = sshll.u32 %s143_s18, 4  ;;  %p872_p13 = pnand %p519_p12, %p845_p6  ;;  %s868_s5 = int_to_ptr.vmem [resolvable:$true] %s152_s5 }
  0x36   : > { %s876_s7 = scalar_lea.sflag [#allocation3], %s139_s23  ;;  %s612_s8 = scalar_lea.hbm %s866_s4, 256 }
  0x37   : > { %p613_p0 = scmp.ne.s32.totalorder %s866_s4, %s612_s8  ;;  %p614_p3 = pneg %p872_p13 }
  0x38   : > { %s617_s22 = scalar_lea.hbm %s975_s0, 512  ;;  %p618_p9 = scmp.lt.u32.totalorder %s866_s4, %s975_s0 }
  0x39   : > { %p615_p5 = pnand %p614_p3, %p613_p0  ;;  %p619_p1 = scmp.lt.u32.totalorder %s617_s22, %s612_s8 }
  0x3a   : > { %p621_p4 = scmp.lt.u32.totalorder %s612_s8, %s866_s4 }
  0x3b   : > { %p616_p7 = pneg %p615_p5  ;;  %p620_p2 = por %p619_p1, %p618_p9 }
  0x3d   : > { %p622_p6 = por %p621_p4, %p620_p2 }
  0x3f   : > { %p623_p8 = pnand %p622_p6, %p616_p7 }
  0x41   : > { %626 = shalt.err (!%p623_p8)
}
  0x42   : > { %s627_s23 = scalar_lea.vmem %s868_s5, 256  ;;  %s733_s29 = smov [#allocation2]  }
  0x43   : > { %p628_p12 = scmp.ne.s32.totalorder %s868_s5, %s627_s23  ;;  %s632_s30 = sshll.u32 %s733_s29, 4  ;;  %s633_s30 = int_to_ptr.vmem [resolvable:$false] %s632_s30 }
  0x44   : > { %s634_s3 = scalar_lea.vmem %s633_s30, 512  ;;  %p635_p5 = scmp.lt.s32.totalorder %s868_s5, %s633_s30 }
  0x45   : > { %p630_p11 = pnand %p628_p12, %p614_p3  ;;  %p636_p9 = scmp.lt.s32.totalorder %s634_s3, %s627_s23 }
  0x47   : > { %p631_p0 = pneg %p630_p11  ;;  %p637_p1 = por %p636_p9, %p635_p5 }
  0x49   : > { %p638_p2 = pnand %p637_p1, %p631_p0 }
  0x4b   : > { %641 = shalt.err (!%p638_p2)
}
  0x4c   : > { %s734_s18 = smov 128   ;;  %s735_s8 = smov 8  }
  0x4d   : > { %513 = dma.hbm_to_vmem [thread:$0]  (!%p872_p13), %s866_s4, 256, %s868_s5, %s876_s7, %s734_s18, %s734_s18, %s735_s8  }
  0x4e   : > { %p992_p3 = scmp.ne.s32.totalorder %s986_s21, 0 }
  0x4f   : > { %s907_s15 = sand.u32 (!%p992_p3), 1, %s712_s10   ;;  %p993_p7 = scmp.ne.s32.totalorder (!%p992_p3), %s984_s19, 0 }
  0x50   : > { %164 = sbr.rel (%p992_p3) target bundleno = 337 (0x151), region = 28  ;;  %s468_s16 = sshll.u32 (!%p992_p3), %s907_s15, 4 }
  0x51   : > { %s167_s22 = scalar_lea.sflag (!%p992_p3), [#allocation3], %s907_s15  ;;  %s170_s24 = scalar_lea.vmem (!%p992_p3), [#allocation2], %s468_s16 }
  0x57   : > { %695 = dma.done.wait (%p993_p7), %s167_s22, 256  }
  0x58   : > { %697 = vsyncadd (%p993_p7), %s167_s22, 4294967040  ;;  %p994_p4 = scmp.ne.s32.totalorder %s982_s17, 0 }
  0x5a   : > { %699 = dma.done.wait (%p994_p4), [#allocation6], 384  }
  0x5b   : > { %701 = vsyncadd (%p994_p4), [#allocation6], 4294966912  ;;  %v736_v0 = vmov 0   ;;  %v578_v1 = vld [vmem:[%s170_s24 + $0x4] ss:$8 sps:$4 sm:$0xff]   ;;  %vm231_vm0 = vcmask 130048  }
  0x5c   : > { %283 = vmatprep.mubr.bf16.mxu1 %v736_v0  ;;  %273 = vmatprep.mubr.bf16.mxu0 %v736_v0  ;;  %v580_v2 = vld [vmem:[%s170_s24] ss:$8 sps:$4 sm:$0xff]   ;;  %s496_s17 = smul.u32 48, %s907_s15  ;;  %s347_s27 = scalar_lea.sflag [#allocation4], %s907_s15 }
  0x5d   : > { %494 = vmatprep.subr.bf16.mxu1 %v578_v1  ;;  %v581_v3 = vld [vmem:[#allocation5 + $0x8] sm:$0xff]   ;;  %241 = vmatprep.subr.bf16.mxu0 %v578_v1  ;;  %v582_v4 = vld [vmem:[#allocation5] sm:$0xff]   ;;  %v583_v5 = vld [vmem:[#allocation5 + $0x10] sm:$0xff]   ;;  %s497_s4 = smul.u32 768, %s720_s12  ;;  %s737_s23 = smov [#allocation7]  }
  0x5e   : > { %495 = vmatpush1.bf16.msra.mxu1 %v580_v2  ;;  %242 = vmatpush1.bf16.msra.mxu0 %v580_v2  ;;  %s194_s19 = scalar_lea.vmem [#allocation7], %s496_s17  ;;  %s646_s29 = sshll.u32 %s737_s23, 4  ;;  %s647_s29 = int_to_ptr.vmem [resolvable:$false] %s646_s29 }
  0x5f   : > { %s362_s21 = sshll.u32 %s194_s19, 4  ;;  %s926_s7 = scalar_lea.hbm %s977_s2, %s497_s4  ;;  %s921_s21 = int_to_ptr.vmem [resolvable:$true] %s362_s21 }
  0x60   : > { %s642_s12 = scalar_lea.vmem %s921_s21, 768  ;;  %s648_s30 = scalar_lea.vmem %s647_s29, 1536 }
  0x61   : > { %476 = vmatmul.mubr.msk.bf16.vlgmr.msra.gmra.mrb[0].mxu1 %vm231_vm0, %v581_v3  ;;  %475 = vmatmul.mubr.msk.bf16.vlgmr.msra.gmra.mrb[0].mxu0 %vm231_vm0, %v582_v4  ;;  %p643_p13 = scmp.ne.s32.totalorder %s921_s21, %s642_s12  ;;  %p649_p12 = scmp.lt.s32.totalorder %s921_s21, %s647_s29 }
  0x62   : > { %293 = vmatprep.mubr.bf16.mxu1 %v736_v0  ;;  %p650_p11 = scmp.lt.s32.totalorder %s648_s30, %s642_s12 }
  0x63   : > { %p644_p6 = pnand %p643_p13, %p851_p10 }
  0x64   : > { %p651_p0 = por %p650_p11, %p649_p12 }
  0x65   : > { %p645_p8 = pneg %p644_p6 }
  0x67   : > { %p652_p5 = pnand %p651_p0, %p645_p8 }
  0x69   : > { %477 = vmatmul.mubr.msk.bf16.gmra.mrb[4].mxu1 %vm231_vm0, %v583_v5 }
 0x134   : > { %v285_v6 = vpop.f32.mrb[0].mxu1  ;;  %v275_v7 = vpop.f32.mrb[0].mxu0 }
 0x135   : > { %v287_v8 = vpop.f32.mrb[1].mxu1  ;;  %v277_v9 = vpop.f32.mrb[1].mxu0 }
 0x136   : > { %v490_v10 = vpack.c.bf16 %v287_v8, %v285_v6  ;;  %v289_v11 = vpop.f32.mrb[2].mxu1  ;;  %v488_v12 = vpack.c.bf16 %v277_v9, %v275_v7  ;;  %v279_v13 = vpop.f32.mrb[2].mxu0 }
 0x137   : > { %v291_v14 = vpop.f32.mrb[3].mxu1  ;;  %v281_v15 = vpop.f32.mrb[3].mxu0 }
 0x138   : > { %342 = vst [vmem:[%s194_s19 + $0x10] sm:$0xff] %v490_v10  ;;  %v491_v16 = vpack.c.bf16 %v291_v14, %v289_v11  ;;  %340 = vst [vmem:[%s194_s19] sm:$0xff] %v488_v12  ;;  %v489_v17 = vpack.c.bf16 %v281_v15, %v279_v13 }
 0x13a   : > { %343 = vst [vmem:[%s194_s19 + $0x18] sm:$0xff] %v491_v16  ;;  %341 = vst [vmem:[%s194_s19 + $0x8] sm:$0xff] %v489_v17 }
 0x13c   : > { %v295_v18 = vpop.f32.mrb[4].mxu1 }
 0x13d   : > { %v297_v19 = vpop.f32.mrb[5].mxu1 }
 0x13e   : > { %v492_v20 = vpack.c.bf16 %v297_v19, %v295_v18  ;;  %v299_v21 = vpop.f32.mrb[6].mxu1 }
 0x13f   : > { %v301_v22 = vpop.f32.mrb[7].mxu1 }
 0x140   : > { %344 = vst [vmem:[%s194_s19 + $0x20] sm:$0xff] %v492_v20  ;;  %v493_v23 = vpack.c.bf16 %v301_v22, %v299_v21 }
 0x142   : > { %345 = vst [vmem:[%s194_s19 + $0x28] sm:$0xff] %v493_v23 }
 0x143   : > { %655 = shalt.err (!%p652_p5)
}
 0x144   : > { %s656_s3 = scalar_lea.hbm %s926_s7, 768  ;;  %s660_s16 = scalar_lea.hbm %s977_s2, 1536 }
 0x145   : > { %p657_p9 = scmp.ne.s32.totalorder %s926_s7, %s656_s3  ;;  %p661_p3 = scmp.lt.u32.totalorder %s926_s7, %s977_s2 }
 0x146   : > { %p662_p7 = scmp.lt.u32.totalorder %s660_s16, %s656_s3  ;;  %p664_p13 = scmp.lt.u32.totalorder %s656_s3, %s926_s7 }
 0x147   : > { %p658_p1 = pnand %p657_p9, %p851_p10 }
 0x148   : > { %p663_p4 = por %p662_p7, %p661_p3 }
 0x149   : > { %p659_p2 = pneg %p658_p1 }
 0x14a   : > { %p665_p6 = por %p664_p13, %p663_p4 }
 0x14c   : > { %p666_p8 = pnand %p665_p6, %p659_p2 }
 0x14e   : > { %669 = shalt.err (!%p666_p8)
}
 0x14f   : > { %s738_s17 = smov 128   ;;  %s739_s19 = smov 8  }
 0x150   : > { %504 = dma.vmem_to_hbm [thread:$0]  (%p851_p10), %s921_s21, 768, %s926_s7, %s347_s27, %s738_s17, %s738_s17, %s739_s19  }
 0x151 PF: > { %s377_s4 = sand.u32 1, %s708_s9   ;;  %p995_p12 = scmp.ne.s32.totalorder %s985_s20, 0 }
 0x152   : > { %p996_p11 = scmp.ge.s32.totalorder %s728_s14, 2  ;;  %s378_s5 = scalar_lea.sflag [#allocation4], %s377_s4 }
 0x154   : > { %p515_p0 = pnand %p996_p11, %p995_p12 }
 0x156   : > { %703 = dma.done.wait (!%p515_p0), %s378_s5, 768  }
 0x157   : > { %705 = vsyncadd (!%p515_p0), %s378_s5, 4294966528  ;;  %s19_s14 = sadd.s32 1, %s728_s14   ;;  %s997_s9 = smov %s712_s10 }
 0x158   : > { %p16_p5 = scmp.ge.s32.totalorder %s19_s14, 4   ;;  %s998_s10 = smov %s716_s11 }
 0x159   : > { %s999_s11 = smov %s860_s28  ;;  %s1000_s12 = smov %s724_s13 }
 0x15a   : > { %s1001_s13 = smov %s1003_s25  ;;  %18 = sbr.rel (!%p16_p5) target bundleno = 7 (0x7), region = 77 }
 0x161   :  { %383 = vsyncpa [#allocation3], 1 }
 0x162   :  { %385 = vsyncpa [#allocation3 + $0x1], 1 }
 0x163   :  { %386 = vsyncpa [#allocation6], 1 }
 0x164   :  { %387 = vsyncpa [#allocation4], 1 }
 0x165   :  { %389 = vsyncpa [#allocation4 + $0x1], 1 }

</bundles_post_ra>
